<compile_context>
chip_gen: v6e
topology: v6e:2x2x1
jax: 0.10.0
libtpu: 0.0.40
codegen_flags: <defaults>
</compile_context>

<pallas_src>
import functools

import jax
import jax.numpy as jnp
from jax.experimental import pallas as pl
from jax.experimental.pallas import tpu as pltpu


def _round_up(x, m):
    return ((x + m - 1) // m) * m


def _hard_leaky_sigmoid_kernel(x_ref, o_ref, *, slope):
    # Reference:  f = where(x<=-1, m*(x+1)-1, where(x>1, m*(x-1)+1, x))
    #             out = max(0.5*(f+1), m*x)
    # Clamp form: f = (1-m)*c + m*x with c = clamp(x, -1, 1), so
    #   out = max(0.5*(1-m)*c + 0.5*m*x + 0.5, m*x)
    #       = t + max(a*c + 0.5, t)   with a = 0.5*(1-m), t = 0.5*m*x
    # -> 7 VALU ops/element, algebraically identical to the reference.
    x = x_ref[...].astype(jnp.float32)   # no-op for f32; exact math for bf16
    a = jnp.float32(0.5 * (1.0 - slope))
    b = jnp.float32(0.5 * slope)
    c = jnp.minimum(jnp.maximum(x, jnp.float32(-1.0)), jnp.float32(1.0))
    t = b * x
    y = t + jnp.maximum(a * c + jnp.float32(0.5), t)
    o_ref[...] = y.astype(o_ref.dtype)


def _hard_leaky_sigmoid_jnp(x, slope):
    # Plain-JAX path, used only for the (<128-element) ragged tail.
    xf = x.astype(jnp.float32)
    f = jnp.where(xf <= -1, slope * (xf + 1) - 1,
                  jnp.where(xf > 1, slope * (xf - 1) + 1, xf))
    return jnp.maximum(0.5 * (f + 1), slope * xf).astype(x.dtype)


def hard_leaky_sigmoid(x, slope=0.01, *, block_bytes=4 * 1024 * 1024, lanes=128):
    """Apply HardLeakySigmoid elementwise via a Pallas TPU kernel."""
    orig_shape = x.shape
    orig_dtype = x.dtype
    n = x.size
    if n == 0:
        return x

    itemsize = jnp.dtype(orig_dtype).itemsize
    flat = x.reshape(-1)                 # free: contiguous reshape
    rem = n % lanes
    n_main = n - rem

    pieces = []
    if n_main:
        rows = n_main // lanes
        slab = (flat if rem == 0 else flat[:n_main]).reshape(rows, lanes)

        # Target ~block_bytes per input block; rows rounded to a multiple of 32
        # sublanes (covers f32 (8,128), bf16 (16,128) and int8/fp8 (32,128)
        # packed-tile minima).  For medium inputs cap the block so the grid has
        # >= 2 steps (v7x shards the parallel axis across its 2 TensorCores).
        br_target = max(32, (block_bytes // (lanes * itemsize)) // 32 * 32)
        if rows <= 64:
            br = rows                    # single full-extent block (always legal)
        else:
            br = min(br_target, _round_up(pl.cdiv(rows, 2), 32))
        grid = (pl.cdiv(rows, br),)      # ragged last block handled by Pallas

        kernel = functools.partial(_hard_leaky_sigmoid_kernel, slope=slope)
        out = pl.pallas_call(
            kernel,
            out_shape=jax.ShapeDtypeStruct((rows, lanes), orig_dtype),
            grid_spec=pltpu.PrefetchScalarGridSpec(
                num_scalar_prefetch=0,
                grid=grid,
                in_specs=[pl.BlockSpec((br, lanes), lambda i: (i, 0))],
                out_specs=pl.BlockSpec((br, lanes), lambda i: (i, 0)),
            ),
            compiler_params=pltpu.CompilerParams(
                dimension_semantics=("parallel",),
                # 2 bufs x (in + out) x ~4 MiB blocks ~= 16 MiB peak; raise the
                # scoped limit past v5e's 16 MiB default while staying well
                # under v7x's 64 MiB physical VMEM.  Default 2-deep pipelining.
                vmem_limit_bytes=48 * 1024 * 1024,
            ),
            cost_estimate=pl.CostEstimate(
                flops=7 * n_main,
                transcendentals=0,
                bytes_accessed=2 * n_main * itemsize,
            ),
        )(slab)
        pieces.append(out.reshape(-1))

    if rem:
        # <128-element ragged tail: tiny follow-up XLA op instead of padding
        # and re-slicing the whole tensor (which doubles HBM traffic).
        pieces.append(_hard_leaky_sigmoid_jnp(flat[n_main:], slope))

    out_flat = pieces[0] if len(pieces) == 1 else jnp.concatenate(pieces)
    return out_flat.reshape(orig_shape)


def _reference(x, slope=0.01):
    f = jnp.where(
        x <= -1, slope * (x + 1) - 1, jnp.where(x > 1, slope * (x - 1) + 1, x)
    )
    return jnp.maximum(0.5 * (f + 1), slope * x)


if __name__ == "__main__":
    key = jax.random.PRNGKey(0)

    # Small NCHW input consistent with a typical activation-module use
    # (lane-aligned: 2*4*16*16 = 2048 elements).
    x = jax.random.normal(key, (2, 4, 16, 16), dtype=jnp.float32) * 2.0
    y = jax.block_until_ready(hard_leaky_sigmoid(x, slope=0.01))
    y_ref = _reference(x, slope=0.01)
    assert y.shape == x.shape and y.dtype == x.dtype
    assert jnp.allclose(y, y_ref, atol=1e-6, rtol=1e-6), "mismatch vs reference"

    # Non-128-multiple size exercises the aligned-prefix + tiny-tail path.
    x2 = jax.random.normal(jax.random.PRNGKey(1), (3, 5, 11), dtype=jnp.float32) * 2.0
    y2 = jax.block_until_ready(hard_leaky_sigmoid(x2, slope=0.01))
    assert y2.shape == x2.shape and y2.dtype == x2.dtype
    assert jnp.allclose(y2, _reference(x2, slope=0.01), atol=1e-6, rtol=1e-6)

    print("KERNEL_OK")
</pallas_src>

<mosaic_0001>
module attributes {stable_mosaic.version = 11 : i64} {
  func.func @_hard_leaky_sigmoid_kernel(%arg0: i32, %arg1: memref<16x128xf32, #tpu.memory_space<vmem>>, %arg2: memref<16x128xf32, #tpu.memory_space<vmem>>) attributes {dimension_semantics = [#tpu.dimension_semantics<parallel>], iteration_bounds = array<i64: 1>, scalar_prefetch = 0 : i64, scratch_operands = 0 : i64, tpu.core_type = #tpu.core_type<tc>, window_params = [{transform_indices = @transform_0, window_bounds = array<i64: 16, 128>}, {transform_indices = @transform_1, window_bounds = array<i64: 16, 128>}]} {
    %c0 = arith.constant 0 : index
    %c0_0 = arith.constant 0 : index
    %0 = vector.load %arg1[%c0, %c0_0] : memref<16x128xf32, #tpu.memory_space<vmem>>, vector<16x128xf32>
    %cst = arith.constant -1.000000e+00 : f32
    %1 = vector.broadcast %cst : f32 to vector<16x128xf32>
    %2 = arith.maximumf %0, %1 : vector<16x128xf32>
    %cst_1 = arith.constant 1.000000e+00 : f32
    %3 = vector.broadcast %cst_1 : f32 to vector<16x128xf32>
    %4 = arith.minimumf %2, %3 : vector<16x128xf32>
    %cst_2 = arith.constant 5.000000e-03 : f32
    %5 = vector.broadcast %cst_2 : f32 to vector<16x128xf32>
    %6 = arith.mulf %5, %0 : vector<16x128xf32>
    %cst_3 = arith.constant 4.950000e-01 : f32
    %7 = vector.broadcast %cst_3 : f32 to vector<16x128xf32>
    %8 = arith.mulf %7, %4 : vector<16x128xf32>
    %cst_4 = arith.constant 5.000000e-01 : f32
    %9 = vector.broadcast %cst_4 : f32 to vector<16x128xf32>
    %10 = arith.addf %8, %9 : vector<16x128xf32>
    %11 = arith.maximumf %10, %6 : vector<16x128xf32>
    %12 = arith.addf %6, %11 : vector<16x128xf32>
    %c0_5 = arith.constant 0 : index
    %c0_6 = arith.constant 0 : index
    %13 = vector.load %arg2[%c0_5, %c0_6] : memref<16x128xf32, #tpu.memory_space<vmem>>, vector<16x128xf32>
    tpu.vector_store %arg2[%c0_5, %c0_6], %12 {strides = array<i32>} : memref<16x128xf32, #tpu.memory_space<vmem>>, vector<16x128xf32>,
    return
  }
  func.func @transform_0(%arg0: i32) -> (i32, i32) {
    %c0_i32 = arith.constant 0 : i32
    %c0_i32_0 = arith.constant 0 : i32
    return %arg0, %c0_i32 : i32, i32
  }
  func.func @transform_1(%arg0: i32) -> (i32, i32) {
    %c0_i32 = arith.constant 0 : i32
    %c0_i32_0 = arith.constant 0 : i32
    return %arg0, %c0_i32 : i32, i32
  }
}

</mosaic_0001>

<bundles_post_ra>
// kernel: tpu_custom_call.1
= control target key start
LH: loop header
LB: loop body
LE: loop exit
PB: predicated region body
PF: predicated region fallthrough
CT: control target
= control target key end

     0   :  { %6 = vsyncpa [#allocation3], 0  ;;  %s134_s0 = inlined_call_operand.hbm [shape: f32[16,128], index: 0, kind: input, shape index: {}]   ;;  %s135_s1 = inlined_call_operand.hbm [shape: f32[16,128], index: 1, kind: output, shape index: {}]  }
   0x1   :  { %7 = vsyncpa [#allocation4], 0  ;;  %s108_s6 = smov [#allocation2]  }
   0x2   :  { %s13_s7 = sshll.u32 %s108_s6, 4  ;;  %s14_s7 = int_to_ptr.vmem [resolvable:$true] %s13_s7 }
   0x3   :  { %s72_s8 = scalar_lea.vmem %s14_s7, 256  ;;  %p77_p1 = scmp.lt.s32.totalorder %s14_s7, %s14_s7 }
   0x4   :  { %p73_p0 = scmp.ne.s32.totalorder %s14_s7, %s72_s8  ;;  %p78_p2 = scmp.lt.s32.totalorder %s72_s8, %s72_s8 }
   0x6   :  { %p79_p3 = por %p78_p2, %p77_p1 }
   0x8   :  { %p80_p4 = pnand %p79_p3, %p73_p0 }
   0xa   :  { %83 = shalt.err (!%p80_p4)
}
   0xb   :  { %s109_s9 = smov 128   ;;  %s110_s10 = smov 8  }
   0xc   :  { %19 = dma.hbm_to_vmem [thread:$0]  %s134_s0, 256, %s14_s7, [#allocation3], %s109_s9, %s109_s9, %s110_s10  }
   0xd   :  { %104 = dma.done.wait [#allocation3], 256  }
   0xe   :  { %105 = vsyncadd [#allocation3], 4294967040  ;;  %v23_v0 = vld [vmem:[#allocation2] sm:$0xff]  ;;  %v24_v1 = vld [vmem:[#allocation2 + $0x8] sm:$0xff]  ;;  %s111_s13 = smov [#allocation5]  }
   0xf   :  { %v58_v2 = vclamps-f32 %v23_v0, 1.0  ;;  %v59_v3 = vclamps-f32 %v24_v1, 1.0  ;;  %v29_v4 = vmul.f32 0.005, %v23_v0  ;;  %v30_v6 = vmul.f32 0.005, %v24_v1 }
  0x10   :  { %s46_s14 = sshll.u32 %s111_s13, 4  ;;  %s47_s14 = int_to_ptr.vmem [resolvable:$true] %s46_s14 }
  0x11   :  { %v31_v5 = vmul.f32 0.495, %v58_v2  ;;  %v32_v7 = vmul.f32 0.495, %v59_v3  ;;  %s84_s0 = scalar_lea.vmem %s47_s14, 256  ;;  %p89_p6 = scmp.lt.s32.totalorder %s47_s14, %s47_s14 }
  0x12   :  { %p85_p5 = scmp.ne.s32.totalorder %s47_s14, %s84_s0  ;;  %p90_p7 = scmp.lt.s32.totalorder %s84_s0, %s84_s0 }
  0x13   :  { %v33_v8 = vadd.f32 0.5, %v31_v5  ;;  %v34_v9 = vadd.f32 0.5, %v32_v7 }
  0x14   :  { %p91_p8 = por %p90_p7, %p89_p6 }
  0x15   :  { %v35_v10 = vmax.f32 %v33_v8, %v29_v4  ;;  %v36_v11 = vmax.f32 %v34_v9, %v30_v6 }
  0x16   :  { %p92_p9 = pnand %p91_p8, %p85_p5 }
  0x17   :  { %v37_v12 = vadd.f32 %v35_v10, %v29_v4  ;;  %v38_v13 = vadd.f32 %v36_v11, %v30_v6 }
  0x19   :  { %39 = vst [vmem:[#allocation5] sm:$0xff] %v37_v12  ;;  %40 = vst [vmem:[#allocation5 + $0x8] sm:$0xff] %v38_v13 }
  0x1a   :  { %95 = shalt.err (!%p92_p9)
}
  0x1b   :  { %52 = dma.vmem_to_hbm [thread:$0]  %s47_s14, 256, %s135_s1, [#allocation4], %s109_s9, %s109_s9, %s110_s10  }
  0x1c   :  { %106 = dma.done.wait [#allocation4], 256  }
  0x1d   :  { %107 = vsyncadd [#allocation4], 4294967040 }
  0x1e   :  { %56 = vsyncpa [#allocation3], 1 }
  0x1f   :  { %57 = vsyncpa [#allocation4], 1 }

</bundles_post_ra>
